<compile_context>
chip_gen: v6e
topology: v6e:2x2x1
jax: 0.10.0
libtpu: 0.0.40
codegen_flags: <defaults>
</compile_context>

<pallas_src>
import warnings
from functools import partial

import jax
import jax.numpy as jnp
from jax.experimental import pallas as pl
from jax.experimental.pallas import tpu as pltpu

# Donation-not-used is a perf hint only; keep logs clean if XLA declines it.
warnings.filterwarnings("ignore", message="Some donated buffers were not usable")

_MAX_TILE_BYTES = 2 * 1024 * 1024  # per-block budget; x4 (dbl-buffered in+out) << 32 MiB VMEM


def _copy_kernel(x_ref, o_ref):
    # Pure identity hot path: one VMEM load + one unmasked lane-dense store.
    o_ref[...] = x_ref[...]


def _identity_2d(x2d: jax.Array) -> jax.Array:
    """Tiled, pipelined copy of a lane-dense (rows, lanes) slab."""
    rows, lanes = x2d.shape
    bytes_per_row = lanes * jnp.dtype(x2d.dtype).itemsize

    tile_rows = max(8, _MAX_TILE_BYTES // bytes_per_row)
    tile_rows = (tile_rows // 8) * 8          # keep sublane alignment
    if tile_rows >= rows:
        tile_rows = rows                      # single block == full array (exempt)

    grid = (pl.cdiv(rows, tile_rows),)
    return pl.pallas_call(
        _copy_kernel,
        out_shape=jax.ShapeDtypeStruct(x2d.shape, x2d.dtype),
        grid=grid,
        in_specs=[pl.BlockSpec((tile_rows, lanes), lambda i: (i, 0))],
        out_specs=pl.BlockSpec((tile_rows, lanes), lambda i: (i, 0)),
        input_output_aliases={0: 0},          # output reuses donated input buffer
        compiler_params=pltpu.CompilerParams(
            dimension_semantics=("parallel",)),
    )(x2d)


@partial(jax.jit, donate_argnums=(0,))
def identity(x: jax.Array) -> jax.Array:
    """Pallas implementation of Identity.forward: returns input unchanged.

    NOTE: the input buffer is donated (aliased into the output); callers must
    not reuse `x` after this call.
    """
    total = x.size
    # Pick the widest lane-dense last dim (multiple of 128) that tiles exactly.
    lanes = next((w for w in (1024, 512, 256, 128) if total % w == 0), None)
    if lanes is None:
        # Ragged total size: fall back to a single whole-array block copy.
        return pl.pallas_call(
            _copy_kernel,
            out_shape=jax.ShapeDtypeStruct(x.shape, x.dtype),
            input_output_aliases={0: 0},
        )(x)

    x2d = x.reshape(total // lanes, lanes)    # free view of a contiguous array
    y2d = _identity_2d(x2d)
    return y2d.reshape(x.shape)


if __name__ == "__main__":
    key = jax.random.PRNGKey(0)
    shape = (2, 4, 16, 16)                    # small NCHW CNN-classifier input
    x = jax.random.normal(key, shape, dtype=jnp.float32)
    # Separate reference buffer with identical values (same key), because `x`
    # itself is donated/aliased into the kernel output.
    x_expected = jax.random.normal(key, shape, dtype=jnp.float32)

    y = identity(x)
    jax.block_until_ready(y)

    assert y.shape == shape and y.dtype == jnp.float32
    assert bool(jnp.array_equal(y, x_expected))
    print("KERNEL_OK")
</pallas_src>

<mosaic_0001>
module attributes {stable_mosaic.version = 11 : i64} {
  func.func @_copy_kernel(%arg0: i32, %arg1: memref<2x1024xf32, #tpu.memory_space<vmem>>, %arg2: memref<2x1024xf32, #tpu.memory_space<vmem>>) attributes {dimension_semantics = [#tpu.dimension_semantics<parallel>], iteration_bounds = array<i64: 1>, scalar_prefetch = 0 : i64, scratch_operands = 0 : i64, tpu.core_type = #tpu.core_type<tc>, window_params = [{transform_indices = @transform_0, window_bounds = array<i64: 2, 1024>}, {transform_indices = @transform_1, window_bounds = array<i64: 2, 1024>}]} {
    %c0 = arith.constant 0 : index
    %c0_0 = arith.constant 0 : index
    %0 = vector.load %arg1[%c0, %c0_0] : memref<2x1024xf32, #tpu.memory_space<vmem>>, vector<2x1024xf32>
    %c0_1 = arith.constant 0 : index
    %c0_2 = arith.constant 0 : index
    %1 = vector.load %arg2[%c0_1, %c0_2] : memref<2x1024xf32, #tpu.memory_space<vmem>>, vector<2x1024xf32>
    tpu.vector_store %arg2[%c0_1, %c0_2], %0 {strides = array<i32>} : memref<2x1024xf32, #tpu.memory_space<vmem>>, vector<2x1024xf32>,
    return
  }
  func.func @transform_0(%arg0: i32) -> (i32, i32) {
    %c0_i32 = arith.constant 0 : i32
    %c0_i32_0 = arith.constant 0 : i32
    return %arg0, %c0_i32 : i32, i32
  }
  func.func @transform_1(%arg0: i32) -> (i32, i32) {
    %c0_i32 = arith.constant 0 : i32
    %c0_i32_0 = arith.constant 0 : i32
    return %arg0, %c0_i32 : i32, i32
  }
}

</mosaic_0001>

<bundles_post_ra>
// kernel: identity.1
= control target key start
LH: loop header
LB: loop body
LE: loop exit
PB: predicated region body
PF: predicated region fallthrough
CT: control target
= control target key end

     0   :  { %s38_s0 = inlined_call_operand.vmem [shape: f32[2,1024], index: 0, kind: input, shape index: {}, may-alias: {0,1}]   ;;  %s39_s1 = inlined_call_operand.vmem [shape: f32[2,1024], index: 1, kind: output, shape index: {}, may-alias: {0,1}]  }
   0x1   :  { %v8_v0 = vld [vmem:[%s38_s0] sm:$0xff]  ;;  %v9_v1 = vld [vmem:[%s38_s0 + $0x8] sm:$0xff] }
   0x2   :  { %10 = vst [vmem:[%s39_s1] sm:$0xff] %v8_v0  ;;  %11 = vst [vmem:[%s39_s1 + $0x8] sm:$0xff] %v9_v1 }

</bundles_post_ra>
